<compile_context>
chip_gen: v7x
topology: tpu7x:2x2x1
jax: 0.10.0
libtpu: 0.0.40
codegen_flags: <defaults>
</compile_context>

<pallas_src>
import functools

import jax
import jax.numpy as jnp
from jax.experimental import pallas as pl
from jax.experimental.pallas import tpu as pltpu

LANE = 128      # lane width: last dim padded to multiples of this
SUBLANE = 8     # f32 sublane: batch padded to multiples of this


def _round_up(n, m):
    return ((n + m - 1) // m) * m


def _mlp_fused_kernel(*refs, num_layers, acts):
    """refs = (x, w0, b0, w1, b1, ..., w_{L-1}, b_{L-1}, o, pre_o).

    x: [TB, D0p]; w_i: [D_ip, D_{i+1}p]; b_i: [1, D_{i+1}p]
    o: [TB, D_Lp]; pre_o: [TB, D_{L-1}p]   (all lane-padded, f32)
    """
    x_ref = refs[0]
    wb = refs[1:1 + 2 * num_layers]
    o_ref = refs[1 + 2 * num_layers]
    pre_ref = refs[2 + 2 * num_layers]

    h = x_ref[...]
    # Hidden layers: MXU matmul + bias + VPU/EUP activation, all in VMEM/vregs.
    for i in range(num_layers - 1):
        w = wb[2 * i][...]
        b = wb[2 * i + 1][...]
        h = jnp.dot(h, w, preferred_element_type=jnp.float32) + b
        a = acts[i]
        if a == "relu":
            h = jnp.maximum(h, 0.0)
        elif a == "sigmoid":
            h = jax.nn.sigmoid(h)
        else:
            raise ValueError(f"{a} activation layer hasn't been implemented")
    pre_ref[...] = h.astype(pre_ref.dtype)

    # Output layer: plain Linear.
    w = wb[-2][...]
    b = wb[-1][...]
    o = jnp.dot(h, w, preferred_element_type=jnp.float32) + b
    o_ref[...] = o.astype(o_ref.dtype)


def mlp_forward_pallas(x, padded_params, sizes, acts, *, max_tile_b=128):
    """Runs the full MLP as one fused Pallas kernel. Returns (o, pre_o)."""
    B, Din = x.shape
    num_layers = len(sizes) - 1
    p_sizes = [_round_up(s, LANE) for s in sizes]

    # Batch tiling: largest multiple of 8 up to max_tile_b; grid over tiles.
    tile_b = min(_round_up(B, SUBLANE), _round_up(max_tile_b, SUBLANE))
    B_p = _round_up(_round_up(B, SUBLANE), tile_b)

    # Zero-pad x to lane-/sublane-aligned shape (zeros keep the math exact).
    x_p = jnp.zeros((B_p, p_sizes[0]), x.dtype).at[:B, :Din].set(x)

    inputs = [x_p]
    in_specs = [pl.BlockSpec((tile_b, p_sizes[0]), lambda i: (i, 0))]
    for li in range(num_layers):
        w_p, b_p = padded_params[li]
        inputs += [w_p, b_p]
        in_specs += [
            pl.BlockSpec((p_sizes[li], p_sizes[li + 1]), lambda i: (0, 0)),
            pl.BlockSpec((1, p_sizes[li + 1]), lambda i: (0, 0)),
        ]

    out_shapes = (
        jax.ShapeDtypeStruct((B_p, p_sizes[-1]), x.dtype),   # o (padded)
        jax.ShapeDtypeStruct((B_p, p_sizes[-2]), x.dtype),   # pre_o (padded)
    )
    out_specs = (
        pl.BlockSpec((tile_b, p_sizes[-1]), lambda i: (i, 0)),
        pl.BlockSpec((tile_b, p_sizes[-2]), lambda i: (i, 0)),
    )

    # Advisory cost estimate so XLA can schedule around the custom call.
    flops = 0
    transcendentals = 0
    bytes_accessed = x_p.size * x_p.dtype.itemsize
    for li in range(num_layers):
        flops += 2 * B_p * p_sizes[li] * p_sizes[li + 1]
        w_p, b_p = padded_params[li]
        bytes_accessed += (w_p.size + b_p.size) * 4
        if li < num_layers - 1 and acts[li] == "sigmoid":
            transcendentals += B_p * p_sizes[li + 1]
    bytes_accessed += (B_p * p_sizes[-1] + B_p * p_sizes[-2]) * 4

    kernel = functools.partial(
        _mlp_fused_kernel, num_layers=num_layers, acts=tuple(acts)
    )

    o_p, pre_p = pl.pallas_call(
        kernel,
        out_shape=out_shapes,
        grid_spec=pltpu.PrefetchScalarGridSpec(
            num_scalar_prefetch=0,
            grid=(B_p // tile_b,),
            in_specs=in_specs,
            out_specs=out_specs,
        ),
        compiler_params=pltpu.CompilerParams(
            dimension_semantics=("parallel",),      # shards across TCs on v7x
            vmem_limit_bytes=32 * 1024 * 1024,      # safe on v5e/v6e/v7x
        ),
        cost_estimate=pl.CostEstimate(
            flops=flops,
            transcendentals=transcendentals,
            bytes_accessed=bytes_accessed,
        ),
    )(*inputs)

    # Slice off lane/batch padding.
    o = o_p[:B, : sizes[-1]]
    pre_o = pre_p[:B, : sizes[-2]]
    return o, pre_o


class MLP:
    """JAX/Pallas port of the PyTorch MLP module (fused single-kernel forward)."""

    def __init__(self, sizes, acts, key):
        if len(sizes) != len(acts) + 2:
            raise ValueError(
                f"length of sizes ({len(sizes)}) and activations "
                f"({len(acts)}) are incompatible"
            )
        self.sizes = list(sizes)
        self.acts = list(acts)
        self.num_layers = len(sizes) - 1
        p_sizes = [_round_up(s, LANE) for s in sizes]

        self.params = []          # exact (unpadded) params, for reference checks
        self.padded_params = []   # zero-padded, lane-aligned, built once at init
        for i in range(self.num_layers):
            key, kw, kb = jax.random.split(key, 3)
            fan_in = sizes[i]
            bound = 1.0 / float(fan_in) ** 0.5
            w = jax.random.uniform(
                kw, (sizes[i], sizes[i + 1]), jnp.float32, -bound, bound
            )
            b = jax.random.uniform(kb, (sizes[i + 1],), jnp.float32, -bound, bound)
            self.params.append((w, b))

            w_p = (
                jnp.zeros((p_sizes[i], p_sizes[i + 1]), jnp.float32)
                .at[: sizes[i], : sizes[i + 1]]
                .set(w)
            )
            b_p = (
                jnp.zeros((1, p_sizes[i + 1]), jnp.float32)
                .at[0, : sizes[i + 1]]
                .set(b)
            )
            self.padded_params.append((w_p, b_p))

    def __call__(self, x, return_preactivations=False):
        o, pre_o = mlp_forward_pallas(x, self.padded_params, self.sizes, self.acts)
        if not return_preactivations:
            return o
        return o, pre_o


if __name__ == "__main__":
    key = jax.random.PRNGKey(0)
    key, kx, kp = jax.random.split(key, 3)

    # small shapes consistent with the module
    sizes = [32, 64, 48, 16]           # input=32, hiddens=[64,48], output=16
    acts = ["relu", "sigmoid"]
    batch = 8

    x = jax.random.normal(kx, (batch, sizes[0]), jnp.float32)

    mlp = MLP(sizes, acts, kp)
    o, pre_o = mlp(x, return_preactivations=True)
    jax.block_until_ready((o, pre_o))

    # sanity check against pure-JAX reference (unpadded params)
    h_ref = x
    for i in range(mlp.num_layers - 1):
        w, b = mlp.params[i]
        h_ref = h_ref @ w + b
        h_ref = jnp.maximum(h_ref, 0.0) if acts[i] == "relu" else jax.nn.sigmoid(h_ref)
    w, b = mlp.params[-1]
    o_ref = h_ref @ w + b

    assert o.shape == (batch, sizes[-1])
    assert pre_o.shape == (batch, sizes[-2])
    assert jnp.allclose(pre_o, h_ref, atol=1e-5), "pre_o mismatch vs reference"
    assert jnp.allclose(o, o_ref, atol=1e-5), "o mismatch vs reference"

    print("KERNEL_OK")
</pallas_src>

<mosaic_0001>
module attributes {stable_mosaic.version = 11 : i64} {
  func.func @_mlp_fused_kernel(%arg0: i32, %arg1: memref<8x128xf32, #tpu.memory_space<vmem>>, %arg2: memref<128x128xf32, #tpu.memory_space<vmem>>, %arg3: memref<1x128xf32, #tpu.memory_space<vmem>>, %arg4: memref<128x128xf32, #tpu.memory_space<vmem>>, %arg5: memref<1x128xf32, #tpu.memory_space<vmem>>, %arg6: memref<128x128xf32, #tpu.memory_space<vmem>>, %arg7: memref<1x128xf32, #tpu.memory_space<vmem>>, %arg8: memref<8x128xf32, #tpu.memory_space<vmem>>, %arg9: memref<8x128xf32, #tpu.memory_space<vmem>>) attributes {dimension_semantics = [#tpu.dimension_semantics<parallel>], iteration_bounds = array<i64: 1>, scalar_prefetch = 0 : i64, scratch_operands = 0 : i64, tpu.core_type = #tpu.core_type<tc>, window_params = [{transform_indices = @transform_0, window_bounds = array<i64: 8, 128>}, {pipeline_mode = #tpu.pipeline_mode<synchronous>, transform_indices = @transform_1, window_bounds = array<i64: 128, 128>}, {pipeline_mode = #tpu.pipeline_mode<synchronous>, transform_indices = @transform_2, window_bounds = array<i64: 1, 128>}, {pipeline_mode = #tpu.pipeline_mode<synchronous>, transform_indices = @transform_3, window_bounds = array<i64: 128, 128>}, {pipeline_mode = #tpu.pipeline_mode<synchronous>, transform_indices = @transform_4, window_bounds = array<i64: 1, 128>}, {pipeline_mode = #tpu.pipeline_mode<synchronous>, transform_indices = @transform_5, window_bounds = array<i64: 128, 128>}, {pipeline_mode = #tpu.pipeline_mode<synchronous>, transform_indices = @transform_6, window_bounds = array<i64: 1, 128>}, {transform_indices = @transform_7, window_bounds = array<i64: 8, 128>}, {transform_indices = @transform_8, window_bounds = array<i64: 8, 128>}]} {
    %c0 = arith.constant 0 : index
    %c0_0 = arith.constant 0 : index
    %0 = vector.load %arg1[%c0, %c0_0] : memref<8x128xf32, #tpu.memory_space<vmem>>, vector<8x128xf32>
    %c0_1 = arith.constant 0 : index
    %c0_2 = arith.constant 0 : index
    %1 = vector.load %arg2[%c0_1, %c0_2] : memref<128x128xf32, #tpu.memory_space<vmem>>, vector<128x128xf32>
    %c0_3 = arith.constant 0 : index
    %c0_4 = arith.constant 0 : index
    %2 = vector.load %arg3[%c0_3, %c0_4] : memref<1x128xf32, #tpu.memory_space<vmem>>, vector<1x128xf32>
    %cst = arith.constant dense<0.000000e+00> : vector<8x128xf32>
    %3 = tpu.matmul %0, %1, %cst {dimension_numbers = #tpu.dot_dimension_numbers<[1], [0], [0], [1], [0, 0, 1, 1], [], []>} : vector<8x128xf32>, vector<128x128xf32>, vector<8x128xf32> -> vector<8x128xf32>
    %4 = vector.broadcast %2 : vector<1x128xf32> to vector<8x128xf32>
    %5 = arith.addf %3, %4 : vector<8x128xf32>
    %cst_5 = arith.constant 0.000000e+00 : f32
    %6 = vector.broadcast %cst_5 : f32 to vector<8x128xf32>
    %7 = arith.maximumf %5, %6 : vector<8x128xf32>
    %c0_6 = arith.constant 0 : index
    %c0_7 = arith.constant 0 : index
    %8 = vector.load %arg4[%c0_6, %c0_7] : memref<128x128xf32, #tpu.memory_space<vmem>>, vector<128x128xf32>
    %c0_8 = arith.constant 0 : index
    %c0_9 = arith.constant 0 : index
    %9 = vector.load %arg5[%c0_8, %c0_9] : memref<1x128xf32, #tpu.memory_space<vmem>>, vector<1x128xf32>
    %cst_10 = arith.constant dense<0.000000e+00> : vector<8x128xf32>
    %10 = tpu.matmul %7, %8, %cst_10 {dimension_numbers = #tpu.dot_dimension_numbers<[1], [0], [0], [1], [0, 0, 1, 1], [], []>} : vector<8x128xf32>, vector<128x128xf32>, vector<8x128xf32> -> vector<8x128xf32>
    %11 = vector.broadcast %9 : vector<1x128xf32> to vector<8x128xf32>
    %12 = arith.addf %10, %11 : vector<8x128xf32>
    %13 = arith.negf %12 : vector<8x128xf32>
    %14 = math.exp %13 : vector<8x128xf32>
    %cst_11 = arith.constant 1.000000e+00 : f32
    %15 = vector.broadcast %cst_11 : f32 to vector<8x128xf32>
    %16 = arith.addf %15, %14 : vector<8x128xf32>
    %17 = arith.divf %15, %16 : vector<8x128xf32>
    %c0_12 = arith.constant 0 : index
    %c0_13 = arith.constant 0 : index
    %18 = vector.load %arg9[%c0_12, %c0_13] : memref<8x128xf32, #tpu.memory_space<vmem>>, vector<8x128xf32>
    tpu.vector_store %arg9[%c0_12, %c0_13], %17 {strides = array<i32>} : memref<8x128xf32, #tpu.memory_space<vmem>>, vector<8x128xf32>,
    %c0_14 = arith.constant 0 : index
    %c0_15 = arith.constant 0 : index
    %19 = vector.load %arg6[%c0_14, %c0_15] : memref<128x128xf32, #tpu.memory_space<vmem>>, vector<128x128xf32>
    %c0_16 = arith.constant 0 : index
    %c0_17 = arith.constant 0 : index
    %20 = vector.load %arg7[%c0_16, %c0_17] : memref<1x128xf32, #tpu.memory_space<vmem>>, vector<1x128xf32>
    %cst_18 = arith.constant dense<0.000000e+00> : vector<8x128xf32>
    %21 = tpu.matmul %17, %19, %cst_18 {dimension_numbers = #tpu.dot_dimension_numbers<[1], [0], [0], [1], [0, 0, 1, 1], [], []>} : vector<8x128xf32>, vector<128x128xf32>, vector<8x128xf32> -> vector<8x128xf32>
    %22 = vector.broadcast %20 : vector<1x128xf32> to vector<8x128xf32>
    %23 = arith.addf %21, %22 : vector<8x128xf32>
    %c0_19 = arith.constant 0 : index
    %c0_20 = arith.constant 0 : index
    %24 = vector.load %arg8[%c0_19, %c0_20] : memref<8x128xf32, #tpu.memory_space<vmem>>, vector<8x128xf32>
    tpu.vector_store %arg8[%c0_19, %c0_20], %23 {strides = array<i32>} : memref<8x128xf32, #tpu.memory_space<vmem>>, vector<8x128xf32>,
    return
  }
  func.func @transform_0(%arg0: i32) -> (i32, i32) {
    %c0_i32 = arith.constant 0 : i32
    %c0_i32_0 = arith.constant 0 : i32
    return %arg0, %c0_i32 : i32, i32
  }
  func.func @transform_1(%arg0: i32) -> (i32, i32) {
    %c0_i32 = arith.constant 0 : i32
    %c0_i32_0 = arith.constant 0 : i32
    %c0_i32_1 = arith.constant 0 : i32
    return %c0_i32, %c0_i32_0 : i32, i32
  }
  func.func @transform_2(%arg0: i32) -> (i32, i32) {
    %c0_i32 = arith.constant 0 : i32
    %c0_i32_0 = arith.constant 0 : i32
    %c0_i32_1 = arith.constant 0 : i32
    return %c0_i32, %c0_i32_0 : i32, i32
  }
  func.func @transform_3(%arg0: i32) -> (i32, i32) {
    %c0_i32 = arith.constant 0 : i32
    %c0_i32_0 = arith.constant 0 : i32
    %c0_i32_1 = arith.constant 0 : i32
    return %c0_i32, %c0_i32_0 : i32, i32
  }
  func.func @transform_4(%arg0: i32) -> (i32, i32) {
    %c0_i32 = arith.constant 0 : i32
    %c0_i32_0 = arith.constant 0 : i32
    %c0_i32_1 = arith.constant 0 : i32
    return %c0_i32, %c0_i32_0 : i32, i32
  }
  func.func @transform_5(%arg0: i32) -> (i32, i32) {
    %c0_i32 = arith.constant 0 : i32
    %c0_i32_0 = arith.constant 0 : i32
    %c0_i32_1 = arith.constant 0 : i32
    return %c0_i32, %c0_i32_0 : i32, i32
  }
  func.func @transform_6(%arg0: i32) -> (i32, i32) {
    %c0_i32 = arith.constant 0 : i32
    %c0_i32_0 = arith.constant 0 : i32
    %c0_i32_1 = arith.constant 0 : i32
    return %c0_i32, %c0_i32_0 : i32, i32
  }
  func.func @transform_7(%arg0: i32) -> (i32, i32) {
    %c0_i32 = arith.constant 0 : i32
    %c0_i32_0 = arith.constant 0 : i32
    return %arg0, %c0_i32 : i32, i32
  }
  func.func @transform_8(%arg0: i32) -> (i32, i32) {
    %c0_i32 = arith.constant 0 : i32
    %c0_i32_0 = arith.constant 0 : i32
    return %arg0, %c0_i32 : i32, i32
  }
}

</mosaic_0001>

<bundles_post_ra>
// kernel: tpu_custom_call.1
= control target key start
LH: loop header
LB: loop body
LE: loop exit
PB: predicated region body
PF: predicated region fallthrough
CT: control target
= control target key end

     0   :  { %14 = vsyncpa [#allocation3], 0  ;;  %s968_s0 = inlined_call_operand.hbm [shape: f32[8,128], index: 0, kind: input, shape index: {}]   ;;  %s969_s1 = inlined_call_operand.hbm [shape: f32[128,128], index: 1, kind: input, shape index: {}]   ;;  %s970_s2 = inlined_call_operand.vmem [shape: f32[1,128], index: 2, kind: input, shape index: {}]   ;;  %s971_s3 = inlined_call_operand.hbm [shape: f32[128,128], index: 3, kind: input, shape index: {}]   ;;  %s972_s4 = inlined_call_operand.vmem [shape: f32[1,128], index: 4, kind: input, shape index: {}]   ;;  %s973_s5 = inlined_call_operand.hbm [shape: f32[128,128], index: 5, kind: input, shape index: {}]   ;;  %s974_s6 = inlined_call_operand.vmem [shape: f32[1,128], index: 6, kind: input, shape index: {}]   ;;  %s975_s7 = inlined_call_operand.hbm [shape: f32[8,128], index: 7, kind: output, shape index: {0}]   ;;  %s976_s8 = inlined_call_operand.hbm [shape: f32[8,128], index: 8, kind: output, shape index: {1}]  }
   0x1   :  { %15 = vsyncpa [#allocation6], 0 }
   0x2   :  { %16 = vsyncpa [#allocation9], 0 }
   0x3   :  { %17 = vsyncpa [#allocation4], 0 }
   0x4   :  { %18 = vsyncpa [#allocation12], 0  ;;  %s792_s27 = smov [#allocation5]   ;;  %s650_s9 = scalar_lea.hbm %s969_s1, 2048 }
   0x5   :  { %s34_s28 = sshll.u32 %s792_s27, 4  ;;  %p651_p0 = scmp.ne.s32.totalorder %s969_s1, %s650_s9  ;;  %s35_s28 = int_to_ptr.vmem [resolvable:$true] %s34_s28 }
   0x6   :  { %p654_p1 = scmp.lt.u32.totalorder %s650_s9, %s969_s1 }
   0x8   :  { %p656_p2 = pnand %p654_p1, %p651_p0 }
   0xa   :  { %659 = shalt.err (!%p656_p2)
}
   0xb   :  { %s660_s14 = scalar_lea.vmem %s35_s28, 2048  ;;  %p665_p4 = scmp.lt.s32.totalorder %s35_s28, %s35_s28 }
   0xc   :  { %p661_p3 = scmp.ne.s32.totalorder %s35_s28, %s660_s14  ;;  %p666_p5 = scmp.lt.s32.totalorder %s660_s14, %s660_s14 }
   0xe   :  { %p667_p6 = por %p666_p5, %p665_p4 }
  0x10   :  { %p668_p7 = pnand %p667_p6, %p661_p3 }
  0x12   :  { %671 = shalt.err (!%p668_p7)
}
  0x13   :  { %s793_s15 = smov 128   ;;  %s794_s16 = smov 8  }
  0x14   :  { %40 = dma.hbm_to_vmem [thread:$0]  %s969_s1, 2048, %s35_s28, [#allocation6], %s793_s15, %s793_s15, %s794_s16  }
  0x15   :  { %s795_s19 = smov [#allocation2]   ;;  %s796_s21 = smov [#allocation7]  }
  0x16   :  { %s25_s20 = sshll.u32 %s795_s19, 4  ;;  %s48_s22 = sshll.u32 %s796_s21, 4  ;;  %s26_s20 = int_to_ptr.vmem [resolvable:$true] %s25_s20  ;;  %s49_s22 = int_to_ptr.vmem [resolvable:$true] %s48_s22 }
  0x17   :  { %s672_s25 = scalar_lea.hbm %s968_s0, 128 }
  0x18   :  { %p673_p8 = scmp.ne.s32.totalorder %s968_s0, %s672_s25  ;;  %p676_p9 = scmp.lt.u32.totalorder %s672_s25, %s968_s0 }
  0x1a   :  { %p678_p10 = pnand %p676_p9, %p673_p8 }
  0x1c   :  { %681 = shalt.err (!%p678_p10)
}
  0x1d   :  { %s682_s1 = scalar_lea.vmem %s26_s20, 128  ;;  %p687_p12 = scmp.lt.s32.totalorder %s26_s20, %s26_s20 }
  0x1e   :  { %p683_p11 = scmp.ne.s32.totalorder %s26_s20, %s682_s1  ;;  %p688_p13 = scmp.lt.s32.totalorder %s682_s1, %s682_s1 }
  0x20   :  { %p689_p0 = por %p688_p13, %p687_p12 }
  0x22   :  { %p690_p1 = pnand %p689_p0, %p683_p11 }
  0x24   :  { %693 = shalt.err (!%p690_p1)
}
  0x25   :  { %28 = dma.hbm_to_vmem [thread:$0]  %s968_s0, 128, %s26_s20, [#allocation3]  }
  0x26   :  { %s694_s12 = scalar_lea.hbm %s971_s3, 2048 }
  0x27   :  { %p695_p2 = scmp.ne.s32.totalorder %s971_s3, %s694_s12  ;;  %p698_p3 = scmp.lt.u32.totalorder %s694_s12, %s971_s3 }
  0x29   :  { %p700_p4 = pnand %p698_p3, %p695_p2 }
  0x2b   :  { %703 = shalt.err (!%p700_p4)
}
  0x2c   :  { %s704_s19 = scalar_lea.vmem %s49_s22, 2048  ;;  %p709_p6 = scmp.lt.s32.totalorder %s49_s22, %s49_s22 }
  0x2d   :  { %p705_p5 = scmp.ne.s32.totalorder %s49_s22, %s704_s19  ;;  %p710_p7 = scmp.lt.s32.totalorder %s704_s19, %s704_s19 }
  0x2f   :  { %p711_p8 = por %p710_p7, %p709_p6 }
  0x31   :  { %p712_p9 = pnand %p711_p8, %p705_p5 }
  0x33   :  { %715 = shalt.err (!%p712_p9)
}
  0x34   :  { %54 = dma.hbm_to_vmem [thread:$0]  %s971_s3, 2048, %s49_s22, [#allocation6], %s793_s15, %s793_s15, %s794_s16  }
  0x35   :  { %s797_s21 = smov [#allocation8]   ;;  %s716_s26 = scalar_lea.hbm %s973_s5, 2048 }
  0x36   :  { %s62_s23 = sshll.u32 %s797_s21, 4  ;;  %p717_p10 = scmp.ne.s32.totalorder %s973_s5, %s716_s26  ;;  %s63_s23 = int_to_ptr.vmem [resolvable:$true] %s62_s23 }
  0x37   :  { %p720_p11 = scmp.lt.u32.totalorder %s716_s26, %s973_s5 }
  0x39   :  { %p722_p12 = pnand %p720_p11, %p717_p10 }
  0x3b   :  { %725 = shalt.err (!%p722_p12)
}
  0x3c   :  { %s726_s28 = scalar_lea.vmem %s63_s23, 2048  ;;  %p731_p0 = scmp.lt.s32.totalorder %s63_s23, %s63_s23 }
  0x3d   :  { %p727_p13 = scmp.ne.s32.totalorder %s63_s23, %s726_s28  ;;  %p732_p1 = scmp.lt.s32.totalorder %s726_s28, %s726_s28 }
  0x3f   :  { %p733_p2 = por %p732_p1, %p731_p0 }
  0x41   :  { %p734_p3 = pnand %p733_p2, %p727_p13 }
  0x43   :  { %737 = shalt.err (!%p734_p3)
}
  0x44   :  { %68 = dma.hbm_to_vmem [thread:$0]  %s973_s5, 2048, %s63_s23, [#allocation9], %s793_s15, %s793_s15, %s794_s16  }
  0x45   :  { %782 = dma.done.wait [#allocation3], 128  }
  0x46   :  { %783 = vsyncadd [#allocation3], 4294967168 }
  0x47   :  { %784 = dma.done.wait [#allocation6], 4096  }
  0x48   :  { %785 = vsyncadd [#allocation6], 4294963200 }
  0x49   :  { %786 = dma.done.wait [#allocation9], 2048  }
  0x4a   :  { %787 = vsyncadd [#allocation9], 4294965248  ;;  %v798_v0 = vmov 0.0|0.0   ;;  %vm799_vm0 = vmmov 0   ;;  %v800_v1 = vmov 0.0   ;;  %v84_v2 = vld [vmem:[#allocation5] sm:$0xff] }
  0x4b   :  { %563 = vmatprep.subr.bf16.mxu0 %v798_v0  ;;  %490 = vmatprep.mubr.msk.f32.mxu0 %vm799_vm0, %v800_v1  ;;  %v85_v3 = vld [vmem:[#allocation5 + $0x8] sm:$0xff]  ;;  %v86_v4 = vld [vmem:[#allocation5 + $0x10] sm:$0xff]  ;;  %v87_v6 = vld [vmem:[#allocation5 + $0x18] sm:$0xff]  ;;  %s801_s9 = smov [#allocation11]  }
  0x4c   :  { %587 = vmatprep.subr.bf16.mxu1 %v798_v0  ;;  %525 = vmatprep.mubr.msk.f32.mxu1 %vm799_vm0, %v800_v1  ;;  %v564_v5 = vpack.c.bf16 %v85_v3, %v84_v2  ;;  %v567_v7 = vpack.c.bf16 %v87_v6, %v86_v4  ;;  %v88_v8 = vld [vmem:[#allocation5 + $0x20] sm:$0xff]  ;;  %v89_v9 = vld [vmem:[#allocation5 + $0x28] sm:$0xff]  ;;  %v180_v12 = vld [vmem:[#allocation7 + $0x10] sm:$0xff]  ;;  %s388_s10 = sshll.u32 %s801_s9, 4  ;;  %s389_s10 = int_to_ptr.vmem [resolvable:$true] %s388_s10 }
  0x4d   :  { %v178_v10 = vld [vmem:[#allocation7] sm:$0xff]  ;;  %v179_v11 = vld [vmem:[#allocation7 + $0x8] sm:$0xff]  ;;  %v181_v13 = vld [vmem:[#allocation7 + $0x18] sm:$0xff]  ;;  %v570_v14 = vpack.c.bf16 %v89_v9, %v88_v8  ;;  %s738_s11 = scalar_lea.vmem %s389_s10, 128  ;;  %p743_p5 = scmp.lt.s32.totalorder %s389_s10, %s389_s10 }
  0x4e   :  { %565 = vmatpush3.bf16.msra.mxu0 %v564_v5  ;;  %v588_v15 = vpack.c.bf16 %v179_v11, %v178_v10  ;;  %v90_v16 = vld [vmem:[#allocation5 + $0x30] sm:$0xff]  ;;  %v91_v17 = vld [vmem:[#allocation5 + $0x38] sm:$0xff]  ;;  %v591_v18 = vpack.c.bf16 %v181_v13, %v180_v12  ;;  %v182_v19 = vld [vmem:[#allocation7 + $0x20] sm:$0xff]  ;;  %p739_p4 = scmp.ne.s32.totalorder %s389_s10, %s738_s11  ;;  %p744_p6 = scmp.lt.s32.totalorder %s738_s11, %s738_s11 }
  0x4f   :  { %566 = vmatprep.subr.bf16.mxu0 %v798_v0  ;;  %v183_v20 = vld [vmem:[#allocation7 + $0x28] sm:$0xff]  ;;  %v573_v21 = vpack.c.bf16 %v91_v17, %v90_v16  ;;  %v92_v22 = vld [vmem:[#allocation5 + $0x40] sm:$0xff]  ;;  %v184_v25 = vld [vmem:[#allocation7 + $0x30] sm:$0xff] }
  0x50   :  { %589 = vmatpush3.bf16.msra.mxu1 %v588_v15  ;;  %v93_v23 = vld [vmem:[#allocation5 + $0x48] sm:$0xff]  ;;  %v594_v24 = vpack.c.bf16 %v183_v20, %v182_v19  ;;  %v185_v26 = vld [vmem:[#allocation7 + $0x38] sm:$0xff]  ;;  %v94_v28 = vld [vmem:[#allocation5 + $0x50] sm:$0xff]  ;;  %p745_p7 = por %p744_p6, %p743_p5 }
  0x51   :  { %590 = vmatprep.subr.bf16.mxu1 %v798_v0  ;;  %v576_v27 = vpack.c.bf16 %v93_v23, %v92_v22  ;;  %v95_v29 = vld [vmem:[#allocation5 + $0x58] sm:$0xff]  ;;  %v597_v30 = vpack.c.bf16 %v185_v26, %v184_v25  ;;  %v186_v31 = vld [vmem:[#allocation7 + $0x40] sm:$0xff]  ;;  %v187_v32 = vld [vmem:[#allocation7 + $0x48] sm:$0xff] }
  0x52   :  { %568 = vmatpush3.bf16.msra.mxu0 %v567_v7  ;;  %v579_v33 = vpack.c.bf16 %v95_v29, %v94_v28  ;;  %v96_v34 = vld [vmem:[#allocation5 + $0x60] sm:$0xff]  ;;  %v97_v35 = vld [vmem:[#allocation5 + $0x68] sm:$0xff]  ;;  %v600_v36 = vpack.c.bf16 %v187_v32, %v186_v31  ;;  %v188_v37 = vld [vmem:[#allocation7 + $0x50] sm:$0xff]  ;;  %p746_p8 = pnand %p745_p7, %p739_p4 }
  0x53   :  { %569 = vmatprep.subr.bf16.mxu0 %v798_v0  ;;  %v189_v38 = vld [vmem:[#allocation7 + $0x58] sm:$0xff]  ;;  %v582_v39 = vpack.c.bf16 %v97_v35, %v96_v34  ;;  %v98_v40 = vld [vmem:[#allocation5 + $0x70] sm:$0xff]  ;;  %v190_v43 = vld [vmem:[#allocation7 + $0x60] sm:$0xff] }
  0x54   :  { %592 = vmatpush3.bf16.msra.mxu1 %v591_v18  ;;  %v99_v41 = vld [vmem:[#allocation5 + $0x78] sm:$0xff]  ;;  %v603_v42 = vpack.c.bf16 %v189_v38, %v188_v37  ;;  %v191_v44 = vld [vmem:[#allocation7 + $0x68] sm:$0xff]  ;;  %v192_v48 = vld [vmem:[#allocation7 + $0x70] sm:$0xff] }
  0x55   :  { %593 = vmatprep.subr.bf16.mxu1 %v798_v0  ;;  %v585_v45 = vpack.c.bf16 %v99_v41, %v98_v40  ;;  %v606_v46 = vpack.c.bf16 %v191_v44, %v190_v43  ;;  %v83_v47 = vld [vmem:[#allocation2] sm:$0xff]  ;;  %v278_v51 = vld [vmem:[#allocation8] sm:$0xff]  ;;  %v279_v52 = vld [vmem:[#allocation8 + $0x8] sm:$0xff] }
  0x56   :  { %571 = vmatpush3.bf16.msra.mxu0 %v570_v14  ;;  %v193_v49 = vld [vmem:[#allocation7 + $0x78] sm:$0xff]  ;;  %v612_v53 = vpack.c.bf16 %v279_v52, %v278_v51  ;;  %v280_v59 = vld [vmem:[#allocation8 + $0x10] sm:$0xff]  ;;  %v282_v62 = vld [vmem:[#allocation8 + $0x20] sm:$0xff] }
  0x57   :  { %572 = vmatprep.subr.bf16.mxu0 %v798_v0  ;;  %v609_v50 = vpack.c.bf16 %v193_v49, %v192_v48  ;;  %v403_v54 = vld [vmem:[%s970_s2] ss:$0 sm:$0xff]  ;;  %v283_v63 = vld [vmem:[#allocation8 + $0x28] sm:$0xff]  ;;  %v284_v2 = vld [vmem:[#allocation8 + $0x30] sm:$0xff] }
  0x58   :  { %595 = vmatpush3.bf16.msra.mxu1 %v594_v24  ;;  %v281_v60 = vld [vmem:[#allocation8 + $0x18] sm:$0xff]  ;;  %v286_v5 = vld [vmem:[#allocation8 + $0x40] sm:$0xff]  ;;  %v287_v6 = vld [vmem:[#allocation8 + $0x48] sm:$0xff] }
  0x59   :  { %596 = vmatprep.subr.bf16.mxu1 %v798_v0  ;;  %v615_v61 = vpack.c.bf16 %v281_v60, %v280_v59  ;;  %v285_v3 = vld [vmem:[#allocation8 + $0x38] sm:$0xff]  ;;  %v624_v7 = vpack.c.bf16 %v287_v6, %v286_v5  ;;  %v288_v8 = vld [vmem:[#allocation8 + $0x50] sm:$0xff]  ;;  %v290_v11 = vld [vmem:[#allocation8 + $0x60] sm:$0xff] }
  0x5a   :  { %574 = vmatpush3.bf16.msra.mxu0 %v573_v21  ;;  %v621_v4 = vpack.c.bf16 %v285_v3, %v284_v2  ;;  %v289_v9 = vld [vmem:[#allocation8 + $0x58] sm:$0xff]  ;;  %v291_v12 = vld [vmem:[#allocation8 + $0x68] sm:$0xff]  ;;  %v292_v14 = vld [vmem:[#allocation8 + $0x70] sm:$0xff] }
  0x5b   :  { %575 = vmatprep.subr.bf16.mxu0 %v798_v0  ;;  %v627_v10 = vpack.c.bf16 %v289_v9, %v288_v8  ;;  %v630_v13 = vpack.c.bf16 %v291_v12, %v290_v11  ;;  %v293_v15 = vld [vmem:[#allocation8 + $0x78] sm:$0xff] }
  0x5c   :  { %598 = vmatpush3.bf16.msra.mxu1 %v597_v30  ;;  %v633_v16 = vpack.c.bf16 %v293_v15, %v292_v14  ;;  %v404_v17 = vld [vmem:[%s972_s4] ss:$0 sm:$0xff] }
  0x5d   :  { %599 = vmatprep.subr.bf16.mxu1 %v798_v0 }
  0x5e   :  { %577 = vmatpush3.bf16.msra.mxu0 %v576_v27 }
  0x5f   :  { %578 = vmatprep.subr.bf16.mxu0 %v798_v0 }
  0x60   :  { %601 = vmatpush3.bf16.msra.mxu1 %v600_v36 }
  0x61   :  { %602 = vmatprep.subr.bf16.mxu1 %v798_v0 }
  0x62   :  { %580 = vmatpush3.bf16.msra.mxu0 %v579_v33 }
  0x63   :  { %581 = vmatprep.subr.bf16.mxu0 %v798_v0 }
  0x64   :  { %604 = vmatpush3.bf16.msra.mxu1 %v603_v42 }
  0x65   :  { %605 = vmatprep.subr.bf16.mxu1 %v798_v0 }
  0x66   :  { %583 = vmatpush3.bf16.msra.mxu0 %v582_v39 }
  0x67   :  { %584 = vmatprep.subr.bf16.mxu0 %v798_v0 }
  0x68   :  { %607 = vmatpush3.bf16.msra.mxu1 %v606_v46 }
  0x69   :  { %608 = vmatprep.subr.bf16.mxu1 %v798_v0 }
  0x6a   :  { %586 = vmatpush3.bf16.msra.mxu0 %v585_v45 }
  0x6b   :  { %611 = vmatprep.subr.bf16.mxu0 %v798_v0 }
  0x6c   :  { %610 = vmatpush3.bf16.msra.mxu1 %v609_v50 }
  0x6d   :  { %491 = vmatmul.mubr.f32.vlgmr.msra.gmra.mrb[0].mxu0 %v83_v47 }
  0x6e   :  { %560 = vmatprep.mubr.msk.f32.mxu0 %vm799_vm0, %v800_v1  ;;  %613 = vmatpush3.bf16.msra.mxu0 %v612_v53  ;;  %v618_v1 = vpack.c.bf16 %v283_v63, %v282_v62 }
  0x6f   :  { %614 = vmatprep.subr.bf16.mxu0 %v798_v0 }
  0x72   :  { %616 = vmatpush3.bf16.msra.mxu0 %v615_v61 }
  0x73   :  { %617 = vmatprep.subr.bf16.mxu0 %v798_v0 }
  0x76   :  { %619 = vmatpush3.bf16.msra.mxu0 %v618_v1 }
  0x77   :  { %620 = vmatprep.subr.bf16.mxu0 %v798_v0 }
  0x7a   :  { %622 = vmatpush3.bf16.msra.mxu0 %v621_v4 }
  0x7b   :  { %623 = vmatprep.subr.bf16.mxu0 %v798_v0 }
  0x7e   :  { %625 = vmatpush3.bf16.msra.mxu0 %v624_v7 }
  0x7f   :  { %626 = vmatprep.subr.bf16.mxu0 %v798_v0 }
  0x82   :  { %628 = vmatpush3.bf16.msra.mxu0 %v627_v10 }
  0x83   :  { %629 = vmatprep.subr.bf16.mxu0 %v798_v0 }
  0x86   :  { %631 = vmatpush3.bf16.msra.mxu0 %v630_v13 }
  0x87   :  { %632 = vmatprep.subr.bf16.mxu0 %v798_v0 }
  0x8a   :  { %634 = vmatpush3.bf16.msra.mxu0 %v633_v16 }
 0x140   :  { %v173_v55 = vpop.f32.mrb[0].mxu0 }
 0x141   :  { %v174_v56 = vadd.f32 %v403_v54, %v173_v55  ;;  %v492_v57 = vpop.f32.mrb[1].mxu0 }
 0x143   :  { %v177_v58 = vmax.f32 %v174_v56, 0.0 }
 0x145   :  { %526 = vmatmul.mubr.f32.vlgmr.msra.gmra.mrb[0].mxu1 %v177_v58 }
 0x218   :  { %v267_v18 = vpop.f32.mrb[0].mxu1 }
 0x219   :  { %v268_v19 = vadd.f32 %v404_v17, %v267_v18  ;;  %v527_v20 = vpop.f32.mrb[1].mxu1 }
 0x21b   :  { %v405_v21 = vmul.f32 -1.442695, %v268_v19 }
 0x21d   :  { %646 = vpow2.f32 %v405_v21 }
 0x227   :  { %v647_v22 = vpop.eup %646 }
 0x228   :  { %v274_v23 = vadd.f32 1.0, %v647_v22 }
 0x22a   :  { %648 = vrcp.f32 %v274_v23 }
 0x234   :  { %v649_v24 = vpop.eup %648 }
 0x235   :  { %277 = vst [vmem:[#allocation11] sm:$0xff] %v649_v24  ;;  %561 = vmatmul.mubr.f32.vlgmr.msra.gmra.mrb[2].mxu0 %v649_v24 }
 0x236   :  { %749 = shalt.err (!%p746_p8)
}
 0x237   :  { %s750_s13 = scalar_lea.hbm %s976_s8, 128 }
 0x238   :  { %p751_p9 = scmp.ne.s32.totalorder %s976_s8, %s750_s13  ;;  %p754_p10 = scmp.lt.u32.totalorder %s750_s13, %s976_s8 }
 0x23a   :  { %p756_p11 = pnand %p754_p10, %p751_p9 }
 0x23c   :  { %759 = shalt.err (!%p756_p11)
}
 0x23d   :  { %391 = dma.vmem_to_hbm [thread:$0]  %s389_s10, 128, %s976_s8, [#allocation12]   ;;  %v406_v0 = vld [vmem:[%s974_s6] ss:$0 sm:$0xff] }
 0x23e   :  { %s802_s24 = smov [#allocation10]  }
 0x23f   :  { %s378_s25 = sshll.u32 %s802_s24, 4  ;;  %s379_s25 = int_to_ptr.vmem [resolvable:$true] %s378_s25 }
 0x240   :  { %s760_s26 = scalar_lea.vmem %s379_s25, 128  ;;  %p765_p13 = scmp.lt.s32.totalorder %s379_s25, %s379_s25 }
 0x241   :  { %p761_p12 = scmp.ne.s32.totalorder %s379_s25, %s760_s26  ;;  %p766_p0 = scmp.lt.s32.totalorder %s760_s26, %s760_s26 }
 0x243   :  { %p767_p1 = por %p766_p0, %p765_p13 }
 0x245   :  { %p768_p2 = pnand %p767_p1, %p761_p12 }
 0x308   :  { %v367_v25 = vpop.f32.mrb[2].mxu0 }
 0x309   :  { %v368_v26 = vadd.f32 %v406_v0, %v367_v25  ;;  %v562_v27 = vpop.f32.mrb[3].mxu0 }
 0x30b   :  { %371 = vst [vmem:[#allocation10] sm:$0xff] %v368_v26 }
 0x30c   :  { %771 = shalt.err (!%p768_p2)
}
 0x30d   :  { %s772_s29 = scalar_lea.hbm %s975_s7, 128 }
 0x30e   :  { %p773_p3 = scmp.ne.s32.totalorder %s975_s7, %s772_s29  ;;  %p776_p4 = scmp.lt.u32.totalorder %s772_s29, %s975_s7 }
 0x310   :  { %p778_p5 = pnand %p776_p4, %p773_p3 }
 0x312   :  { %781 = shalt.err (!%p778_p5)
}
 0x313   :  { %381 = dma.vmem_to_hbm [thread:$0]  %s379_s25, 128, %s975_s7, [#allocation4]  }
 0x314   :  { %788 = dma.done.wait [#allocation4], 128  }
 0x315   :  { %789 = vsyncadd [#allocation4], 4294967168 }
 0x316   :  { %790 = dma.done.wait [#allocation12], 128  }
 0x317   :  { %791 = vsyncadd [#allocation12], 4294967168 }
 0x318   :  { %398 = vsyncpa [#allocation3], 1 }
 0x319   :  { %399 = vsyncpa [#allocation6], 1 }
 0x31a   :  { %400 = vsyncpa [#allocation9], 1 }
 0x31b   :  { %401 = vsyncpa [#allocation4], 1 }
 0x31c   :  { %402 = vsyncpa [#allocation12], 1 }

</bundles_post_ra>
